<compile_context>
chip_gen: v7x
topology: tpu7x:2x2x1
jax: 0.10.0
libtpu: 0.0.40
codegen_flags: <defaults>
</compile_context>

<pallas_src>
import jax
import jax.numpy as jnp
from jax import lax
from jax.experimental import pallas as pl
from jax.experimental.pallas import tpu as pltpu


# ----------------------------------------------------------------------------
# Fused kernel: one grid step == one chunk of tc timesteps
# ----------------------------------------------------------------------------
def _make_fused_kernel(B, unroll, n_outer):
    group = unroll * B

    def kernel(ins_ref, x0_ref, w0_ref, w1_ref, whh_ref, X_ref, z_ref, x_carry):
        # Initialize the recurrent carry once, at the first chunk.
        @pl.when(pl.program_id(0) == 0)
        def _():
            x_carry[...] = x0_ref[...].astype(jnp.float32)

        # Non-recurrent precompute for the WHOLE chunk as one batched MXU matmul pair:
        #   z = relu(ins @ W_ih0^T) @ W_ih1^T        (tc*B, nx), kept in VMEM scratch.
        # This work is off the carry dependency chain, so it hides under the
        # latency-bound recurrence below.
        h = jnp.maximum(
            jnp.dot(ins_ref[...], w0_ref[...], preferred_element_type=jnp.float32),
            0.0)
        z_ref[...] = jnp.dot(h, w1_ref[...], preferred_element_type=jnp.float32)

        whh = whh_ref[...]

        # Recurrence: tc = n_outer * unroll timesteps.  Outer loop stays rolled
        # (bounded code size); inner loop is unrolled so the carry stays in vregs
        # and the scratch carry ref is touched only once per group.
        @pl.loop(0, n_outer)
        def _(oo):
            base = pl.multiple_of(oo * group, group)

            def step(ii, x):
                row = pl.multiple_of(base + ii * B, B)
                x_new = jnp.maximum(
                    z_ref[pl.ds(row, B), :]
                    + jnp.dot(x, whh, preferred_element_type=jnp.float32),
                    0.0)
                X_ref[pl.ds(row, B), :] = x_new.astype(X_ref.dtype)
                return x_new

            x_carry[...] = lax.fori_loop(0, unroll, step, x_carry[...], unroll=True)

    return kernel


def rnn_forward(x0, M_flow, DT, D, w_ih0, w_hh0, w_ih1, w_hh1, *, tc=256, unroll=8):
    """Pallas implementation of RNN.forward.

    x0     : (B, nx)
    M_flow : (T, B, n_m)
    DT     : (T, B, n_dT)
    D      : (T, B, nd)
    returns (X: (T, B, nx), Y: (T, B))
    """
    del w_hh0  # layer-0 hidden state is reset to zeros every step -> W_hh0 term vanishes
    T, B, _ = M_flow.shape
    nx = x0.shape[-1]

    # Glue: torch.cat([m_flow, dT, d], dim=1) across all timesteps; pre-transpose weights.
    ins_all = jnp.concatenate([M_flow, DT, D], axis=-1).astype(jnp.float32)  # (T, B, D_in)
    D_in = ins_all.shape[-1]
    w0_t = w_ih0.T.astype(jnp.float32)    # (D_in, D_in)
    w1_t = w_ih1.T.astype(jnp.float32)    # (D_in, nx)
    whh_t = w_hh1.T.astype(jnp.float32)   # (nx, nx)
    x0 = x0.astype(jnp.float32)

    # Chunking: tc timesteps per sequential grid step, processed in groups of `unroll`.
    tc = max(1, min(tc, T))
    unroll = max(1, min(unroll, tc))
    tc -= tc % unroll                     # tc is a multiple of unroll
    n_outer = tc // unroll
    n_chunks = pl.cdiv(T, tc)
    T_pad = n_chunks * tc

    # 2-D sublane-dense layout: (T*B, D_in); pad timesteps so chunks tile evenly.
    ins2 = ins_all.reshape(T * B, D_in)
    if T_pad != T:
        ins2 = jnp.pad(ins2, ((0, (T_pad - T) * B), (0, 0)))

    kernel = _make_fused_kernel(B, unroll, n_outer)

    X2 = pl.pallas_call(
        kernel,
        out_shape=jax.ShapeDtypeStruct((T_pad * B, nx), jnp.float32),
        grid_spec=pltpu.PrefetchScalarGridSpec(
            num_scalar_prefetch=0,
            grid=(n_chunks,),
            in_specs=[
                pl.BlockSpec((tc * B, D_in), lambda c: (c, 0)),  # ins chunk (sublane-dense)
                pl.BlockSpec((B, nx), lambda c: (0, 0)),         # x0 (resident)
                pl.BlockSpec((D_in, D_in), lambda c: (0, 0)),    # W_ih0^T (resident)
                pl.BlockSpec((D_in, nx), lambda c: (0, 0)),      # W_ih1^T (resident)
                pl.BlockSpec((nx, nx), lambda c: (0, 0)),        # W_hh1^T (resident)
            ],
            out_specs=pl.BlockSpec((tc * B, nx), lambda c: (c, 0)),   # X chunk
            scratch_shapes=[
                pltpu.VMEM((tc * B, nx), jnp.float32),   # z chunk -- never touches HBM
                pltpu.VMEM((B, nx), jnp.float32),        # recurrent carry x
            ],
        ),
        compiler_params=pltpu.CompilerParams(
            dimension_semantics=("arbitrary",)),   # time recurrence -> sequential grid
    )(ins2, x0, w0_t, w1_t, whh_t)

    X = X2.reshape(T_pad, B, nx)[:T]
    Y = X[:, :, -1]   # y = x[:, -1]; cheap XLA slice instead of a last-dim-1 kernel output
    return X, Y


def ref_forward(x0, M_flow, DT, D, w_ih0, w_hh0, w_ih1, w_hh1):
    """Pure-JAX reference matching the PyTorch module exactly."""
    x = x0
    Xs = []
    for t in range(M_flow.shape[0]):
        ins = jnp.concatenate([M_flow[t], DT[t], D[t]], axis=1)
        h = jnp.zeros_like(ins)
        h = jnp.maximum(ins @ w_ih0.T + h @ w_hh0.T, 0.0)
        x = jnp.maximum(h @ w_ih1.T + x @ w_hh1.T, 0.0)
        Xs.append(x)
    X = jnp.stack(Xs)
    return X, X[:, :, -1]


if __name__ == "__main__":
    # Small shapes consistent with the module; T=20 exercises multi-chunk + padding paths
    # (tc rounds to 16 -> 2 chunks, T_pad=32).
    T, B = 20, 4
    n_m, n_dT, nd, nx = 8, 8, 8, 16
    D_in = n_m + n_dT + nd

    key = jax.random.PRNGKey(0)
    ks = jax.random.split(key, 8)

    x0     = jax.random.normal(ks[0], (B, nx), dtype=jnp.float32)
    M_flow = jax.random.normal(ks[1], (T, B, n_m), dtype=jnp.float32)
    DT     = jax.random.normal(ks[2], (T, B, n_dT), dtype=jnp.float32)
    D      = jax.random.normal(ks[3], (T, B, nd), dtype=jnp.float32)

    # Deterministic parameter init (nn.RNNCell uses U(-1/sqrt(H), 1/sqrt(H))).
    def uinit(k, shape, hidden):
        bound = 1.0 / jnp.sqrt(jnp.asarray(hidden, jnp.float32))
        return jax.random.uniform(k, shape, jnp.float32, -bound, bound)

    w_ih0 = uinit(ks[4], (D_in, D_in), D_in)  # cell0 W_ih
    w_hh0 = uinit(ks[5], (D_in, D_in), D_in)  # cell0 W_hh (term is exactly zero: h starts at 0)
    w_ih1 = uinit(ks[6], (nx, D_in), nx)      # cell1 W_ih
    w_hh1 = uinit(ks[7], (nx, nx), nx)        # cell1 W_hh

    X, Y = rnn_forward(x0, M_flow, DT, D, w_ih0, w_hh0, w_ih1, w_hh1)
    jax.block_until_ready((X, Y))

    X_ref, Y_ref = ref_forward(x0, M_flow, DT, D, w_ih0, w_hh0, w_ih1, w_hh1)
    assert X.shape == (T, B, nx) and Y.shape == (T, B)
    assert jnp.allclose(X, X_ref, atol=1e-3, rtol=1e-3)
    assert jnp.allclose(Y, Y_ref, atol=1e-3, rtol=1e-3)

    print("KERNEL_OK")
</pallas_src>

<mosaic_0001>
module attributes {stable_mosaic.version = 11 : i64} {
  func.func @kernel(%arg0: i32, %arg1: memref<64x24xf32, #tpu.memory_space<vmem>>, %arg2: memref<4x16xf32, #tpu.memory_space<vmem>>, %arg3: memref<24x24xf32, #tpu.memory_space<vmem>>, %arg4: memref<24x16xf32, #tpu.memory_space<vmem>>, %arg5: memref<16x16xf32, #tpu.memory_space<vmem>>, %arg6: memref<64x16xf32, #tpu.memory_space<vmem>>, %arg7: memref<64x16xf32, #tpu.memory_space<vmem>>, %arg8: memref<4x16xf32, #tpu.memory_space<vmem>>) attributes {dimension_semantics = [#tpu.dimension_semantics<arbitrary>], iteration_bounds = array<i64: 2>, scalar_prefetch = 0 : i64, scratch_operands = 2 : i64, tpu.core_type = #tpu.core_type<tc>, window_params = [{transform_indices = @transform_0, window_bounds = array<i64: 64, 24>}, {pipeline_mode = #tpu.pipeline_mode<synchronous>, transform_indices = @transform_1, window_bounds = array<i64: 4, 16>}, {pipeline_mode = #tpu.pipeline_mode<synchronous>, transform_indices = @transform_2, window_bounds = array<i64: 24, 24>}, {pipeline_mode = #tpu.pipeline_mode<synchronous>, transform_indices = @transform_3, window_bounds = array<i64: 24, 16>}, {pipeline_mode = #tpu.pipeline_mode<synchronous>, transform_indices = @transform_4, window_bounds = array<i64: 16, 16>}, {transform_indices = @transform_5, window_bounds = array<i64: 64, 16>}]} {
    %c0_i32 = arith.constant 0 : i32
    %0 = arith.cmpi eq, %arg0, %c0_i32 : i32
    %1 = arith.extui %0 : i1 to i32
    %c0_i32_0 = arith.constant 0 : i32
    %2 = arith.cmpi ne, %1, %c0_i32_0 : i32
    scf.if %2 {
      %c0_14 = arith.constant 0 : index
      %c0_15 = arith.constant 0 : index
      %13 = vector.load %arg2[%c0_14, %c0_15] : memref<4x16xf32, #tpu.memory_space<vmem>>, vector<4x16xf32>
      %c0_16 = arith.constant 0 : index
      %c0_17 = arith.constant 0 : index
      %14 = vector.load %arg8[%c0_16, %c0_17] : memref<4x16xf32, #tpu.memory_space<vmem>>, vector<4x16xf32>
      tpu.vector_store %arg8[%c0_16, %c0_17], %13 {strides = array<i32>} : memref<4x16xf32, #tpu.memory_space<vmem>>, vector<4x16xf32>,
    } else {
    }
    %c0 = arith.constant 0 : index
    %c0_1 = arith.constant 0 : index
    %3 = vector.load %arg1[%c0, %c0_1] : memref<64x24xf32, #tpu.memory_space<vmem>>, vector<64x24xf32>
    %c0_2 = arith.constant 0 : index
    %c0_3 = arith.constant 0 : index
    %4 = vector.load %arg3[%c0_2, %c0_3] : memref<24x24xf32, #tpu.memory_space<vmem>>, vector<24x24xf32>
    %cst = arith.constant dense<0.000000e+00> : vector<64x24xf32>
    %5 = tpu.matmul %3, %4, %cst {dimension_numbers = #tpu.dot_dimension_numbers<[1], [0], [0], [1], [0, 0, 1, 1], [], []>} : vector<64x24xf32>, vector<24x24xf32>, vector<64x24xf32> -> vector<64x24xf32>
    %cst_4 = arith.constant 0.000000e+00 : f32
    %6 = vector.broadcast %cst_4 : f32 to vector<64x24xf32>
    %7 = arith.maximumf %5, %6 : vector<64x24xf32>
    %c0_5 = arith.constant 0 : index
    %c0_6 = arith.constant 0 : index
    %8 = vector.load %arg4[%c0_5, %c0_6] : memref<24x16xf32, #tpu.memory_space<vmem>>, vector<24x16xf32>
    %cst_7 = arith.constant dense<0.000000e+00> : vector<64x16xf32>
    %9 = tpu.matmul %7, %8, %cst_7 {dimension_numbers = #tpu.dot_dimension_numbers<[1], [0], [0], [1], [0, 0, 1, 1], [], []>} : vector<64x24xf32>, vector<24x16xf32>, vector<64x16xf32> -> vector<64x16xf32>
    %c0_8 = arith.constant 0 : index
    %c0_9 = arith.constant 0 : index
    %10 = vector.load %arg7[%c0_8, %c0_9] : memref<64x16xf32, #tpu.memory_space<vmem>>, vector<64x16xf32>
    tpu.vector_store %arg7[%c0_8, %c0_9], %9 {strides = array<i32>} : memref<64x16xf32, #tpu.memory_space<vmem>>, vector<64x16xf32>,
    %c0_10 = arith.constant 0 : index
    %c0_11 = arith.constant 0 : index
    %11 = vector.load %arg5[%c0_10, %c0_11] : memref<16x16xf32, #tpu.memory_space<vmem>>, vector<16x16xf32>
    %c0_i32_12 = arith.constant 0 : i32
    %c2_i32 = arith.constant 2 : i32
    %12 = arith.addi %c0_i32_12, %c2_i32 : i32
    %c1_i32 = arith.constant 1 : i32
    scf.for %arg9 = %c0_i32_12 to %12 step %c1_i32  : i32 {
      %c1_i32_14 = arith.constant 1 : i32
      %13 = arith.muli %arg9, %c1_i32_14 : i32
      %c0_i32_15 = arith.constant 0 : i32
      %14 = arith.addi %c0_i32_15, %13 : i32
      %c32_i32 = arith.constant 32 : i32
      %15 = arith.muli %14, %c32_i32 : i32
      %16 = tpu.assume_multiple %15, 32 : i32
      %c0_16 = arith.constant 0 : index
      %c0_17 = arith.constant 0 : index
      %17 = vector.load %arg8[%c0_16, %c0_17] : memref<4x16xf32, #tpu.memory_space<vmem>>, vector<4x16xf32>
      %c0_i32_18 = arith.constant 0 : i32
      %c4_i32 = arith.constant 4 : i32
      %18 = arith.muli %c0_i32_18, %c4_i32 : i32
      %19 = arith.addi %16, %18 : i32
      %20 = tpu.assume_multiple %19, 4 : i32
      %21 = arith.index_cast %20 : i32 to index
      %c0_19 = arith.constant 0 : index
      %22 = vector.load %arg7[%21, %c0_19] : memref<64x16xf32, #tpu.memory_space<vmem>>, vector<4x16xf32>
      %cst_20 = arith.constant dense<0.000000e+00> : vector<4x16xf32>
      %23 = tpu.matmul %17, %11, %cst_20 {dimension_numbers = #tpu.dot_dimension_numbers<[1], [0], [0], [1], [0, 0, 1, 1], [], []>} : vector<4x16xf32>, vector<16x16xf32>, vector<4x16xf32> -> vector<4x16xf32>
      %24 = arith.addf %22, %23 : vector<4x16xf32>
      %cst_21 = arith.constant 0.000000e+00 : f32
      %25 = vector.broadcast %cst_21 : f32 to vector<4x16xf32>
      %26 = arith.maximumf %24, %25 : vector<4x16xf32>
      %27 = arith.index_cast %20 : i32 to index
      %c0_22 = arith.constant 0 : index
      %28 = vector.load %arg6[%27, %c0_22] : memref<64x16xf32, #tpu.memory_space<vmem>>, vector<4x16xf32>
      tpu.vector_store %arg6[%27, %c0_22], %26 {strides = array<i32>} : memref<64x16xf32, #tpu.memory_space<vmem>>, vector<4x16xf32>,
      %c1_i32_23 = arith.constant 1 : i32
      %c4_i32_24 = arith.constant 4 : i32
      %29 = arith.muli %c1_i32_23, %c4_i32_24 : i32
      %30 = arith.addi %16, %29 : i32
      %31 = tpu.assume_multiple %30, 4 : i32
      %32 = arith.index_cast %31 : i32 to index
      %c0_25 = arith.constant 0 : index
      %33 = vector.load %arg7[%32, %c0_25] : memref<64x16xf32, #tpu.memory_space<vmem>>, vector<4x16xf32>
      %cst_26 = arith.constant dense<0.000000e+00> : vector<4x16xf32>
      %34 = tpu.matmul %26, %11, %cst_26 {dimension_numbers = #tpu.dot_dimension_numbers<[1], [0], [0], [1], [0, 0, 1, 1], [], []>} : vector<4x16xf32>, vector<16x16xf32>, vector<4x16xf32> -> vector<4x16xf32>
      %35 = arith.addf %33, %34 : vector<4x16xf32>
      %cst_27 = arith.constant 0.000000e+00 : f32
      %36 = vector.broadcast %cst_27 : f32 to vector<4x16xf32>
      %37 = arith.maximumf %35, %36 : vector<4x16xf32>
      %38 = arith.index_cast %31 : i32 to index
      %c0_28 = arith.constant 0 : index
      %39 = vector.load %arg6[%38, %c0_28] : memref<64x16xf32, #tpu.memory_space<vmem>>, vector<4x16xf32>
      tpu.vector_store %arg6[%38, %c0_28], %37 {strides = array<i32>} : memref<64x16xf32, #tpu.memory_space<vmem>>, vector<4x16xf32>,
      %c2_i32_29 = arith.constant 2 : i32
      %c4_i32_30 = arith.constant 4 : i32
      %40 = arith.muli %c2_i32_29, %c4_i32_30 : i32
      %41 = arith.addi %16, %40 : i32
      %42 = tpu.assume_multiple %41, 4 : i32
      %43 = arith.index_cast %42 : i32 to index
      %c0_31 = arith.constant 0 : index
      %44 = vector.load %arg7[%43, %c0_31] : memref<64x16xf32, #tpu.memory_space<vmem>>, vector<4x16xf32>
      %cst_32 = arith.constant dense<0.000000e+00> : vector<4x16xf32>
      %45 = tpu.matmul %37, %11, %cst_32 {dimension_numbers = #tpu.dot_dimension_numbers<[1], [0], [0], [1], [0, 0, 1, 1], [], []>} : vector<4x16xf32>, vector<16x16xf32>, vector<4x16xf32> -> vector<4x16xf32>
      %46 = arith.addf %44, %45 : vector<4x16xf32>
      %cst_33 = arith.constant 0.000000e+00 : f32
      %47 = vector.broadcast %cst_33 : f32 to vector<4x16xf32>
      %48 = arith.maximumf %46, %47 : vector<4x16xf32>
      %49 = arith.index_cast %42 : i32 to index
      %c0_34 = arith.constant 0 : index
      %50 = vector.load %arg6[%49, %c0_34] : memref<64x16xf32, #tpu.memory_space<vmem>>, vector<4x16xf32>
      tpu.vector_store %arg6[%49, %c0_34], %48 {strides = array<i32>} : memref<64x16xf32, #tpu.memory_space<vmem>>, vector<4x16xf32>,
      %c3_i32 = arith.constant 3 : i32
      %c4_i32_35 = arith.constant 4 : i32
      %51 = arith.muli %c3_i32, %c4_i32_35 : i32
      %52 = arith.addi %16, %51 : i32
      %53 = tpu.assume_multiple %52, 4 : i32
      %54 = arith.index_cast %53 : i32 to index
      %c0_36 = arith.constant 0 : index
      %55 = vector.load %arg7[%54, %c0_36] : memref<64x16xf32, #tpu.memory_space<vmem>>, vector<4x16xf32>
      %cst_37 = arith.constant dense<0.000000e+00> : vector<4x16xf32>
      %56 = tpu.matmul %48, %11, %cst_37 {dimension_numbers = #tpu.dot_dimension_numbers<[1], [0], [0], [1], [0, 0, 1, 1], [], []>} : vector<4x16xf32>, vector<16x16xf32>, vector<4x16xf32> -> vector<4x16xf32>
      %57 = arith.addf %55, %56 : vector<4x16xf32>
      %cst_38 = arith.constant 0.000000e+00 : f32
      %58 = vector.broadcast %cst_38 : f32 to vector<4x16xf32>
      %59 = arith.maximumf %57, %58 : vector<4x16xf32>
      %60 = arith.index_cast %53 : i32 to index
      %c0_39 = arith.constant 0 : index
      %61 = vector.load %arg6[%60, %c0_39] : memref<64x16xf32, #tpu.memory_space<vmem>>, vector<4x16xf32>
      tpu.vector_store %arg6[%60, %c0_39], %59 {strides = array<i32>} : memref<64x16xf32, #tpu.memory_space<vmem>>, vector<4x16xf32>,
      %c4_i32_40 = arith.constant 4 : i32
      %c4_i32_41 = arith.constant 4 : i32
      %62 = arith.muli %c4_i32_40, %c4_i32_41 : i32
      %63 = arith.addi %16, %62 : i32
      %64 = tpu.assume_multiple %63, 4 : i32
      %65 = arith.index_cast %64 : i32 to index
      %c0_42 = arith.constant 0 : index
      %66 = vector.load %arg7[%65, %c0_42] : memref<64x16xf32, #tpu.memory_space<vmem>>, vector<4x16xf32>
      %cst_43 = arith.constant dense<0.000000e+00> : vector<4x16xf32>
      %67 = tpu.matmul %59, %11, %cst_43 {dimension_numbers = #tpu.dot_dimension_numbers<[1], [0], [0], [1], [0, 0, 1, 1], [], []>} : vector<4x16xf32>, vector<16x16xf32>, vector<4x16xf32> -> vector<4x16xf32>
      %68 = arith.addf %66, %67 : vector<4x16xf32>
      %cst_44 = arith.constant 0.000000e+00 : f32
      %69 = vector.broadcast %cst_44 : f32 to vector<4x16xf32>
      %70 = arith.maximumf %68, %69 : vector<4x16xf32>
      %71 = arith.index_cast %64 : i32 to index
      %c0_45 = arith.constant 0 : index
      %72 = vector.load %arg6[%71, %c0_45] : memref<64x16xf32, #tpu.memory_space<vmem>>, vector<4x16xf32>
      tpu.vector_store %arg6[%71, %c0_45], %70 {strides = array<i32>} : memref<64x16xf32, #tpu.memory_space<vmem>>, vector<4x16xf32>,
      %c5_i32 = arith.constant 5 : i32
      %c4_i32_46 = arith.constant 4 : i32
      %73 = arith.muli %c5_i32, %c4_i32_46 : i32
      %74 = arith.addi %16, %73 : i32
      %75 = tpu.assume_multiple %74, 4 : i32
      %76 = arith.index_cast %75 : i32 to index
      %c0_47 = arith.constant 0 : index
      %77 = vector.load %arg7[%76, %c0_47] : memref<64x16xf32, #tpu.memory_space<vmem>>, vector<4x16xf32>
      %cst_48 = arith.constant dense<0.000000e+00> : vector<4x16xf32>
      %78 = tpu.matmul %70, %11, %cst_48 {dimension_numbers = #tpu.dot_dimension_numbers<[1], [0], [0], [1], [0, 0, 1, 1], [], []>} : vector<4x16xf32>, vector<16x16xf32>, vector<4x16xf32> -> vector<4x16xf32>
      %79 = arith.addf %77, %78 : vector<4x16xf32>
      %cst_49 = arith.constant 0.000000e+00 : f32
      %80 = vector.broadcast %cst_49 : f32 to vector<4x16xf32>
      %81 = arith.maximumf %79, %80 : vector<4x16xf32>
      %82 = arith.index_cast %75 : i32 to index
      %c0_50 = arith.constant 0 : index
      %83 = vector.load %arg6[%82, %c0_50] : memref<64x16xf32, #tpu.memory_space<vmem>>, vector<4x16xf32>
      tpu.vector_store %arg6[%82, %c0_50], %81 {strides = array<i32>} : memref<64x16xf32, #tpu.memory_space<vmem>>, vector<4x16xf32>,
      %c6_i32 = arith.constant 6 : i32
      %c4_i32_51 = arith.constant 4 : i32
      %84 = arith.muli %c6_i32, %c4_i32_51 : i32
      %85 = arith.addi %16, %84 : i32
      %86 = tpu.assume_multiple %85, 4 : i32
      %87 = arith.index_cast %86 : i32 to index
      %c0_52 = arith.constant 0 : index
      %88 = vector.load %arg7[%87, %c0_52] : memref<64x16xf32, #tpu.memory_space<vmem>>, vector<4x16xf32>
      %cst_53 = arith.constant dense<0.000000e+00> : vector<4x16xf32>
      %89 = tpu.matmul %81, %11, %cst_53 {dimension_numbers = #tpu.dot_dimension_numbers<[1], [0], [0], [1], [0, 0, 1, 1], [], []>} : vector<4x16xf32>, vector<16x16xf32>, vector<4x16xf32> -> vector<4x16xf32>
      %90 = arith.addf %88, %89 : vector<4x16xf32>
      %cst_54 = arith.constant 0.000000e+00 : f32
      %91 = vector.broadcast %cst_54 : f32 to vector<4x16xf32>
      %92 = arith.maximumf %90, %91 : vector<4x16xf32>
      %93 = arith.index_cast %86 : i32 to index
      %c0_55 = arith.constant 0 : index
      %94 = vector.load %arg6[%93, %c0_55] : memref<64x16xf32, #tpu.memory_space<vmem>>, vector<4x16xf32>
      tpu.vector_store %arg6[%93, %c0_55], %92 {strides = array<i32>} : memref<64x16xf32, #tpu.memory_space<vmem>>, vector<4x16xf32>,
      %c7_i32 = arith.constant 7 : i32
      %c4_i32_56 = arith.constant 4 : i32
      %95 = arith.muli %c7_i32, %c4_i32_56 : i32
      %96 = arith.addi %16, %95 : i32
      %97 = tpu.assume_multiple %96, 4 : i32
      %98 = arith.index_cast %97 : i32 to index
      %c0_57 = arith.constant 0 : index
      %99 = vector.load %arg7[%98, %c0_57] : memref<64x16xf32, #tpu.memory_space<vmem>>, vector<4x16xf32>
      %cst_58 = arith.constant dense<0.000000e+00> : vector<4x16xf32>
      %100 = tpu.matmul %92, %11, %cst_58 {dimension_numbers = #tpu.dot_dimension_numbers<[1], [0], [0], [1], [0, 0, 1, 1], [], []>} : vector<4x16xf32>, vector<16x16xf32>, vector<4x16xf32> -> vector<4x16xf32>
      %101 = arith.addf %99, %100 : vector<4x16xf32>
      %cst_59 = arith.constant 0.000000e+00 : f32
      %102 = vector.broadcast %cst_59 : f32 to vector<4x16xf32>
      %103 = arith.maximumf %101, %102 : vector<4x16xf32>
      %104 = arith.index_cast %97 : i32 to index
      %c0_60 = arith.constant 0 : index
      %105 = vector.load %arg6[%104, %c0_60] : memref<64x16xf32, #tpu.memory_space<vmem>>, vector<4x16xf32>
      tpu.vector_store %arg6[%104, %c0_60], %103 {strides = array<i32>} : memref<64x16xf32, #tpu.memory_space<vmem>>, vector<4x16xf32>,
      %c8_i32 = arith.constant 8 : i32
      %c0_61 = arith.constant 0 : index
      %c0_62 = arith.constant 0 : index
      %106 = vector.load %arg8[%c0_61, %c0_62] : memref<4x16xf32, #tpu.memory_space<vmem>>, vector<4x16xf32>
      tpu.vector_store %arg8[%c0_61, %c0_62], %103 {strides = array<i32>} : memref<4x16xf32, #tpu.memory_space<vmem>>, vector<4x16xf32>,
    }
    %c2_i32_13 = arith.constant 2 : i32
    return
  }
  func.func @transform_0(%arg0: i32) -> (i32, i32) {
    %c0_i32 = arith.constant 0 : i32
    %c0_i32_0 = arith.constant 0 : i32
    return %arg0, %c0_i32 : i32, i32
  }
  func.func @transform_1(%arg0: i32) -> (i32, i32) {
    %c0_i32 = arith.constant 0 : i32
    %c0_i32_0 = arith.constant 0 : i32
    %c0_i32_1 = arith.constant 0 : i32
    return %c0_i32, %c0_i32_0 : i32, i32
  }
  func.func @transform_2(%arg0: i32) -> (i32, i32) {
    %c0_i32 = arith.constant 0 : i32
    %c0_i32_0 = arith.constant 0 : i32
    %c0_i32_1 = arith.constant 0 : i32
    return %c0_i32, %c0_i32_0 : i32, i32
  }
  func.func @transform_3(%arg0: i32) -> (i32, i32) {
    %c0_i32 = arith.constant 0 : i32
    %c0_i32_0 = arith.constant 0 : i32
    %c0_i32_1 = arith.constant 0 : i32
    return %c0_i32, %c0_i32_0 : i32, i32
  }
  func.func @transform_4(%arg0: i32) -> (i32, i32) {
    %c0_i32 = arith.constant 0 : i32
    %c0_i32_0 = arith.constant 0 : i32
    %c0_i32_1 = arith.constant 0 : i32
    return %c0_i32, %c0_i32_0 : i32, i32
  }
  func.func @transform_5(%arg0: i32) -> (i32, i32) {
    %c0_i32 = arith.constant 0 : i32
    %c0_i32_0 = arith.constant 0 : i32
    return %arg0, %c0_i32 : i32, i32
  }
}

</mosaic_0001>

<bundles_post_ra>
// kernel: tpu_custom_call.1
= control target key start
LH: loop header
LB: loop body
LE: loop exit
PB: predicated region body
PF: predicated region fallthrough
CT: control target
= control target key end

     0   :  { %s1586_s18 = smov 0   ;;  %s1745_s0 = inlined_call_operand.vmem [shape: f32[128,24], index: 0, kind: input, shape index: {}]   ;;  %s1746_s1 = inlined_call_operand.vmem [shape: f32[4,16], index: 1, kind: input, shape index: {}]   ;;  %s1747_s2 = inlined_call_operand.vmem [shape: f32[24,24], index: 2, kind: input, shape index: {}]   ;;  %s1748_s3 = inlined_call_operand.vmem [shape: f32[24,16], index: 3, kind: input, shape index: {}]   ;;  %s1749_s4 = inlined_call_operand.vmem [shape: f32[16,16], index: 4, kind: input, shape index: {}]   ;;  %s1750_s5 = inlined_call_operand.vmem [shape: f32[128,16], index: 5, kind: output, shape index: {}]  }
   0x1 LB: > { %s1283_s19 = sadd.s32 4294967295, %s1547_s18   ;;  %p1287_p0 = scmp.ge.s32.totalorder %s1547_s18, 1  ;;  %s1547_s18 = sphi %s1586_s18, %s15_s18  }
   0x2   : > { %p188_p1 = scmp.lt.s32.totalorder %s1547_s18, 3 }
   0x4   : > { %p189_p2 = pnand %p1287_p0, %p188_p1 }
   0x5   : > { %s1288_s20 = sshll.u32 (!%p189_p2), %s1283_s19, 3  ;;  %p1292_p4 = scmp.ne.s32.totalorder (!%p189_p2), %s1283_s19, 0 }
   0x6   : > { %192 = sbr.rel (%p189_p2) target bundleno = 2205 (0x89d), region = 40  ;;  %p217_p3 = scmp.lt.s32.totalorder (!%p189_p2), %s1288_s20, 15 }
   0xd   : > { %s1752_s20 = smov (!%p217_p3, %s1288_s20), 15  ;;  %231 = sbr.rel (%p1292_p4) target bundleno = 20 (0x14), region = 44 }
   0xe   : > { %s1289_s21 = sshll.u32 %s1752_s20, 3  ;;  %v232_v0 = vld [vmem:[%s1746_s1] sm:$0xf] (!%p1292_p4)  ;;  %vm233_vm0 = vcmask (!%p1292_p4), 125952  }
   0xf   : > { %s1597_s24 = scalar_lea.vmem %s1745_s0, %s1289_s21  ;;  %s1602_s27 = scalar_lea.vmem %s1750_s5, %s1289_s21  ;;  %234 = vst.msk [vmem:[#allocation3] sm:$0xf] (!%p1292_p4), %vm233_vm0, %v232_v0 }
  0x14 PF: > { %v243_v1 = vld [vmem:[%s1747_s2] sm:$0xff]  ;;  %v244_v2 = vld [vmem:[%s1747_s2 + $0x8] sm:$0xff]  ;;  %vm246_vm1 = vcmask 195584   ;;  %v245_v5 = vld [vmem:[%s1747_s2 + $0x10] sm:$0xff]  ;;  %vm516_vm2 = vcmask 130048   ;;  %s1667_s22 = smov 0  }
  0x15   : > { %v1486_v3 = vpack.c.bf16 %v244_v2, %v243_v1  ;;  %v235_v4 = vld [vmem:[%s1597_s24] sm:$0xff]  ;;  %v385_v7 = vld [vmem:[%s1748_s3 + $0x8] sm:$0xff]  ;;  %v237_v10 = vld [vmem:[%s1597_s24 + $0x10] sm:$0xff] }
  0x16   : > { %1400 = vmatprep.mubr.msk.f32.mxu0 %vm246_vm1, %v235_v4  ;;  %v384_v6 = vld [vmem:[%s1748_s3] sm:$0xff]  ;;  %v236_v9 = vld [vmem:[%s1597_s24 + $0x8] sm:$0xff]  ;;  %v238_v11 = vld [vmem:[%s1597_s24 + $0x18] sm:$0xff] }
  0x17   : > { %1487 = vmatprep.subr.bf16.mxu0 %v1486_v3  ;;  %v1490_v8 = vpack.c.bf16 %v385_v7, %v384_v6  ;;  %v239_v12 = vld [vmem:[%s1597_s24 + $0x20] sm:$0xff]  ;;  %v240_v13 = vld [vmem:[%s1597_s24 + $0x28] sm:$0xff]  ;;  %v241_v14 = vld [vmem:[%s1597_s24 + $0x30] sm:$0xff] }
  0x18   : > { %1489 = vmatpush3.bf16.msra.mxu0 %v1486_v3  ;;  %v242_v15 = vld [vmem:[%s1597_s24 + $0x38] sm:$0xff]  ;;  %v386_v16 = vld [vmem:[%s1748_s3 + $0x10] sm:$0xff]  ;;  %v1652_v33 = vld [vmem:[%s1749_s4] sm:$0xff] }
  0x19   : > { %1398 = vmatprep.subr.mxu0 %v245_v5  ;;  %1491 = vmatprep.subr.bf16.mxu1 %v1490_v8  ;;  %v1657_v34 = vld [vmem:[%s1749_s4 + $0x8] sm:$0xff] }
  0x1a   : > { %1493 = vmatpush3.bf16.msra.mxu1 %v1490_v8 }
  0x1b   : > { %1416 = vmatprep.subr.mxu1 %v386_v16 }
  0x1c   : > { %1399 = vmatpush3.msra.mxu0 %v245_v5 }
  0x1d   : > { %1401 = vmatmul.mubr.msk.f32.vlgmr.msra.gmra.mrb[0].mxu0 %vm246_vm1, %v236_v9 }
  0x1e   : > { %1403 = vmatprep.mubr.msk.f32.mxu0 %vm246_vm1, %v237_v10  ;;  %1417 = vmatpush3.msra.mxu1 %v386_v16 }
  0x21   : > { %1404 = vmatmul.mubr.msk.f32.gmra.mrb[2].mxu0 %vm246_vm1, %v238_v11 }
  0x22   : > { %1406 = vmatprep.mubr.msk.f32.mxu0 %vm246_vm1, %v239_v12 }
  0x25   : > { %1407 = vmatmul.mubr.msk.f32.gmra.mrb[4].mxu0 %vm246_vm1, %v240_v13 }
  0x26   : > { %1409 = vmatprep.mubr.msk.f32.mxu0 %vm246_vm1, %v241_v14 }
  0x29   : > { %1410 = vmatmul.mubr.msk.f32.gmra.mrb[6].mxu0 %vm246_vm1, %v242_v15 }
  0xf0   : > { %v1402_v17 = vpop.f32.mrb[0].mxu0 }
  0xf1   : > { %v337_v18 = vpop.f32.mrb[1].mxu0  ;;  %v377_v20 = vmax.f32 %v1402_v17, 0.0 }
  0xf2   : > { %v376_v19 = vmax.f32 %v337_v18, 0.0 }
  0xf4   : > { %v1405_v21 = vpop.f32.mrb[2].mxu0  ;;  %1418 = vmatprep.mubr.msk.f32.mxu1 %vm246_vm1, %v376_v19 }
  0xf5   : > { %v347_v22 = vpop.f32.mrb[3].mxu0  ;;  %1419 = vmatmul.mubr.msk.f32.vlgmr.msra.gmra.mrb[0].mxu1 %vm246_vm1, %v377_v20  ;;  %v379_v24 = vmax.f32 %v1405_v21, 0.0 }
  0xf6   : > { %v378_v23 = vmax.f32 %v347_v22, 0.0 }
  0xf8   : > { %v1408_v25 = vpop.f32.mrb[4].mxu0  ;;  %1421 = vmatprep.mubr.msk.f32.mxu1 %vm246_vm1, %v378_v23 }
  0xf9   : > { %v357_v26 = vpop.f32.mrb[5].mxu0  ;;  %1422 = vmatmul.mubr.msk.f32.gmra.mrb[2].mxu1 %vm246_vm1, %v379_v24  ;;  %v381_v28 = vmax.f32 %v1408_v25, 0.0 }
  0xfa   : > { %v380_v27 = vmax.f32 %v357_v26, 0.0 }
  0xfc   : > { %v1411_v29 = vpop.f32.mrb[6].mxu0  ;;  %1424 = vmatprep.mubr.msk.f32.mxu1 %vm246_vm1, %v380_v27 }
  0xfd   : > { %v367_v30 = vpop.f32.mrb[7].mxu0  ;;  %1425 = vmatmul.mubr.msk.f32.gmra.mrb[4].mxu1 %vm246_vm1, %v381_v28  ;;  %v383_v32 = vmax.f32 %v1411_v29, 0.0 }
  0xfe   : > { %v382_v31 = vmax.f32 %v367_v30, 0.0 }
 0x100   : > { %1427 = vmatprep.mubr.msk.f32.mxu1 %vm246_vm1, %v382_v31 }
 0x101   : > { %1428 = vmatmul.mubr.msk.f32.gmra.mrb[6].mxu1 %vm246_vm1, %v383_v32 }
 0x1c8   : > { %v1420_v35 = vpop.f32.mrb[0].mxu1 }
 0x1c9   : > { %518 = vst.msk [vmem:[#allocation2 + $0x8] sm:$0xff] %vm516_vm2, %v1420_v35  ;;  %v477_v36 = vpop.f32.mrb[1].mxu1 }
 0x1ca   : > { %517 = vst.msk [vmem:[#allocation2] sm:$0xff] %vm516_vm2, %v477_v36 }
 0x1cc   : > { %v1423_v37 = vpop.f32.mrb[2].mxu1 }
 0x1cd   : > { %520 = vst.msk [vmem:[#allocation2 + $0x18] sm:$0xff] %vm516_vm2, %v1423_v37  ;;  %v487_v38 = vpop.f32.mrb[3].mxu1 }
 0x1ce   : > { %519 = vst.msk [vmem:[#allocation2 + $0x10] sm:$0xff] %vm516_vm2, %v487_v38 }
 0x1d0   : > { %v1426_v39 = vpop.f32.mrb[4].mxu1 }
 0x1d1   : > { %522 = vst.msk [vmem:[#allocation2 + $0x28] sm:$0xff] %vm516_vm2, %v1426_v39  ;;  %v497_v40 = vpop.f32.mrb[5].mxu1 }
 0x1d2   : > { %521 = vst.msk [vmem:[#allocation2 + $0x20] sm:$0xff] %vm516_vm2, %v497_v40 }
 0x1d4   : > { %v1429_v41 = vpop.f32.mrb[6].mxu1 }
 0x1d5   : > { %524 = vst.msk [vmem:[#allocation2 + $0x38] sm:$0xff] %vm516_vm2, %v1429_v41  ;;  %v507_v42 = vpop.f32.mrb[7].mxu1 }
 0x1d6   : > { %523 = vst.msk [vmem:[#allocation2 + $0x30] sm:$0xff] %vm516_vm2, %v507_v42 }
 0x1d7 LB: >> { %v1674_v43 = vpack.c.bf16 %v1657_v34, %v1652_v33  ;;  %v1553_v44 = vmov 0.0|0.0   ;;  %vm1554_vm3 = vmmov 0   ;;  %v1555_v45 = vmov 0.0   ;;  %v534_v46 = vld [vmem:[#allocation3] sm:$0xf]  ;;  %s1309_s23 = sshll.u32 %s1551_s22, 5  ;;  %s1551_s22 = sphi %s1667_s22, %s532_s22  }
 0x1d8   : >> { %1494 = vmatprep.subr.bf16.mxu0 %v1553_v44  ;;  %1434 = vmatprep.mubr.msk.f32.mxu0 %vm1554_vm3, %v1555_v45  ;;  %s1687_s24 = scalar_lea.vmem [#allocation2], %s1309_s23  ;;  %s1691_s25 = scalar_lea.vmem %s1602_s27, %s1309_s23  ;;  %vm613_vm4 = vcmask 125952  }
 0x1d9   : >> { %1496 = vmatpush3.bf16.msra.mxu0 %v1674_v43  ;;  %1497 = vmatprep.subr.bf16.mxu1 %v1553_v44  ;;  %s532_s22 = sadd.s32 1, %s1551_s22  }
 0x1da   : >> { %1499 = vmatpush3.bf16.msra.mxu1 %v1674_v43  ;;  %1441 = vmatprep.mubr.msk.f32.mxu1 %vm1554_vm3, %v1555_v45  ;;  %p529_p5 = scmp.ge.s32.totalorder %s532_s22, 2  }
 0x1db   : >> { %1500 = vmatprep.subr.bf16.mxu0 %v1553_v44  ;;  %1503 = vmatprep.subr.bf16.mxu1 %v1553_v44 }
 0x1dc   : >> { %1435 = vmatmul.mubr.msk.f32.vlgmr.msra.gmra.mrb[0].mxu0 %vm516_vm2, %v534_v46 }
 0x1dd   : >> { %1502 = vmatpush3.bf16.msra.mxu0 %v1674_v43  ;;  %1448 = vmatprep.mubr.msk.f32.mxu0 %vm1554_vm3, %v1555_v45  ;;  %v536_v47 = vld [vmem:[%s1687_s24] sm:$0xf]  ;;  %v1312_v52 = vld [vmem:[%s1687_s24 + $0x4] sm:$0xf]  ;;  %v1317_v57 = vld [vmem:[%s1687_s24 + $0x8] sm:$0xf] }
 0x1de   : >> { %1506 = vmatprep.subr.bf16.mxu0 %v1553_v44  ;;  %v1322_v62 = vld [vmem:[%s1687_s24 + $0xc] sm:$0xf]  ;;  %v1327_v3 = vld [vmem:[%s1687_s24 + $0x10] sm:$0xf]  ;;  %v1332_v8 = vld [vmem:[%s1687_s24 + $0x14] sm:$0xf] }
 0x1df   : >> { %v1337_v13 = vld [vmem:[%s1687_s24 + $0x18] sm:$0xf]  ;;  %v1342_v18 = vld [vmem:[%s1687_s24 + $0x1c] sm:$0xf] }
 0x2af   : >> { %v606_v48 = vpop.f32.mrb[0].mxu0 }
 0x2b0   : >> { %v610_v49 = vadd.f32 %v606_v48, %v536_v47  ;;  %v1436_v50 = vpop.f32.mrb[1].mxu0 }
 0x2b2   : >> { %v611_v51 = vmax.f32 %v610_v49, 0.0 }
 0x2b4   : >> { %614 = vst.msk [vmem:[%s1691_s25] sm:$0xf] %vm613_vm4, %v611_v51  ;;  %1442 = vmatmul.mubr.msk.f32.vlgmr.msra.gmra.mrb[0].mxu1 %vm516_vm2, %v611_v51 }
 0x2b5   : >> { %1505 = vmatpush3.bf16.msra.mxu1 %v1674_v43  ;;  %1455 = vmatprep.mubr.msk.f32.mxu1 %vm1554_vm3, %v1555_v45 }
 0x2b6   : >> { %1509 = vmatprep.subr.bf16.mxu1 %v1553_v44 }
 0x387   : >> { %v687_v53 = vpop.f32.mrb[0].mxu1 }
 0x388   : >> { %v691_v54 = vadd.f32 %v1312_v52, %v687_v53  ;;  %v1443_v55 = vpop.f32.mrb[1].mxu1 }
 0x38a   : >> { %v692_v56 = vmax.f32 %v691_v54, 0.0 }
 0x38c   : >> { %1315 = vst.msk [vmem:[%s1691_s25 + $0x4] sm:$0xf] %vm613_vm4, %v692_v56  ;;  %1449 = vmatmul.mubr.msk.f32.vlgmr.msra.gmra.mrb[2].mxu0 %vm516_vm2, %v692_v56 }
 0x38d   : >> { %1508 = vmatpush3.bf16.msra.mxu0 %v1674_v43  ;;  %1462 = vmatprep.mubr.msk.f32.mxu0 %vm1554_vm3, %v1555_v45 }
 0x38e   : >> { %1512 = vmatprep.subr.bf16.mxu0 %v1553_v44 }
 0x45f   : >> { %v767_v58 = vpop.f32.mrb[2].mxu0 }
 0x460   : >> { %v771_v59 = vadd.f32 %v1317_v57, %v767_v58  ;;  %v1450_v60 = vpop.f32.mrb[3].mxu0 }
 0x462   : >> { %v772_v61 = vmax.f32 %v771_v59, 0.0 }
 0x464   : >> { %1320 = vst.msk [vmem:[%s1691_s25 + $0x8] sm:$0xf] %vm613_vm4, %v772_v61  ;;  %1456 = vmatmul.mubr.msk.f32.vlgmr.msra.gmra.mrb[2].mxu1 %vm516_vm2, %v772_v61 }
 0x465   : >> { %1511 = vmatpush3.bf16.msra.mxu1 %v1674_v43  ;;  %1469 = vmatprep.mubr.msk.f32.mxu1 %vm1554_vm3, %v1555_v45 }
 0x466   : >> { %1515 = vmatprep.subr.bf16.mxu1 %v1553_v44 }
 0x537   : >> { %v847_v63 = vpop.f32.mrb[2].mxu1 }
 0x538   : >> { %v851_v0 = vadd.f32 %v1322_v62, %v847_v63  ;;  %v1457_v1 = vpop.f32.mrb[3].mxu1 }
 0x53a   : >> { %v852_v2 = vmax.f32 %v851_v0, 0.0 }
 0x53c   : >> { %1325 = vst.msk [vmem:[%s1691_s25 + $0xc] sm:$0xf] %vm613_vm4, %v852_v2  ;;  %1463 = vmatmul.mubr.msk.f32.vlgmr.msra.gmra.mrb[4].mxu0 %vm516_vm2, %v852_v2 }
 0x53d   : >> { %1514 = vmatpush3.bf16.msra.mxu0 %v1674_v43  ;;  %1476 = vmatprep.mubr.msk.f32.mxu0 %vm1554_vm3, %v1555_v45 }
 0x60f   : >> { %v927_v4 = vpop.f32.mrb[4].mxu0 }
 0x610   : >> { %v931_v5 = vadd.f32 %v1327_v3, %v927_v4  ;;  %v1464_v6 = vpop.f32.mrb[5].mxu0 }
 0x612   : >> { %v932_v7 = vmax.f32 %v931_v5, 0.0 }
 0x614   : >> { %1330 = vst.msk [vmem:[%s1691_s25 + $0x10] sm:$0xf] %vm613_vm4, %v932_v7  ;;  %1470 = vmatmul.mubr.msk.f32.vlgmr.msra.gmra.mrb[4].mxu1 %vm516_vm2, %v932_v7 }
 0x615   : >> { %1517 = vmatpush3.bf16.msra.mxu1 %v1674_v43  ;;  %1483 = vmatprep.mubr.msk.f32.mxu1 %vm1554_vm3, %v1555_v45 }
 0x6e7   : >> { %v1007_v9 = vpop.f32.mrb[4].mxu1 }
 0x6e8   : >> { %v1011_v10 = vadd.f32 %v1332_v8, %v1007_v9  ;;  %v1471_v11 = vpop.f32.mrb[5].mxu1 }
 0x6ea   : >> { %v1012_v12 = vmax.f32 %v1011_v10, 0.0 }
 0x6ec   : >> { %1335 = vst.msk [vmem:[%s1691_s25 + $0x14] sm:$0xf] %vm613_vm4, %v1012_v12  ;;  %1477 = vmatmul.mubr.msk.f32.vlgmr.msra.gmra.mrb[6].mxu0 %vm516_vm2, %v1012_v12 }
 0x7bf   : >> { %v1087_v14 = vpop.f32.mrb[6].mxu0 }
 0x7c0   : >> { %v1091_v15 = vadd.f32 %v1337_v13, %v1087_v14  ;;  %v1478_v16 = vpop.f32.mrb[7].mxu0 }
 0x7c2   : >> { %v1092_v17 = vmax.f32 %v1091_v15, 0.0 }
 0x7c4   : >> { %1340 = vst.msk [vmem:[%s1691_s25 + $0x18] sm:$0xf] %vm613_vm4, %v1092_v17  ;;  %1484 = vmatmul.mubr.msk.f32.vlgmr.msra.gmra.mrb[6].mxu1 %vm516_vm2, %v1092_v17 }
 0x896   : > { %531 = sbr.rel (!%p529_p5) target bundleno = 471 (0x1d7), region = 97 }
 0x897   : >> { %v1167_v19 = vpop.f32.mrb[6].mxu1 }
 0x898   : >> { %v1171_v20 = vadd.f32 %v1342_v18, %v1167_v19  ;;  %v1485_v21 = vpop.f32.mrb[7].mxu1 }
 0x89a   : >> { %v1172_v22 = vmax.f32 %v1171_v20, 0.0 }
 0x89c   : >> { %1345 = vst.msk [vmem:[%s1691_s25 + $0x1c] sm:$0xf] %vm613_vm4, %v1172_v22  ;;  %1175 = vst.msk [vmem:[#allocation3] sm:$0xf] %vm613_vm4, %v1172_v22 }
 0x89d PF: > { %s15_s18 = sadd.s32 1, %s1547_s18  }
 0x89e   : > { %p12_p6 = scmp.ge.s32.totalorder %s15_s18, 4  }
 0x8a0   :  { %14 = sbr.rel (!%p12_p6) target bundleno = 1 (0x1), region = 108 }

</bundles_post_ra>
